<compile_context>
chip_gen: v7x
topology: tpu7x:2x2x1
jax: 0.10.0
libtpu: 0.0.40
codegen_flags: <defaults>
</compile_context>

<pallas_src>
import functools

import jax
import jax.numpy as jnp
from jax import lax
from jax.experimental import pallas as pl
from jax.experimental.pallas import tpu as pltpu

_SLACK_BYTES = 2 << 20       # headroom for compiler-internal scratch / bookkeeping
_MIN_VMEM_LIMIT = 16 << 20


def _vmem_budget_bytes():
    """~3/4 of per-core VMEM: ~48 MiB on v7x (64 MiB), ~96 MiB on v5e/v6e (128 MiB)."""
    try:
        cap = int(pltpu.get_tpu_info().vmem_capacity_bytes)
    except Exception:
        cap = 0
    if cap <= 0:
        cap = 64 << 20       # conservative default (v7x per-TensorCore)
    return (cap * 3) // 4


# ---------------------------------------------------------------------------
# Single-pass kernel: whole samples as lane-dense rows, multi-row blocks.
# ---------------------------------------------------------------------------
def _normalize_rows_kernel(x_ref, o_ref):
    # x_ref / o_ref: (TB, CHW) — TB whole samples, each flattened lane-dense.
    x = x_ref[...]
    row_min = jnp.min(x, axis=-1, keepdims=True)      # exact in any dtype
    row_max = jnp.max(x, axis=-1, keepdims=True)
    # Exact per-row f32 divide (TB scalars) -> one VPU multiply over the tile.
    inv = 1.0 / (row_max.astype(jnp.float32) - row_min.astype(jnp.float32)
                 + jnp.float32(1e-6))
    o_ref[...] = ((x - row_min) * inv.astype(x.dtype)).astype(o_ref.dtype)


def _choose_block_rows(n, row_bytes, sublane, target_bytes, budget_bytes):
    """Rows per grid step for the single-pass kernel; 0 => use two-pass fallback."""
    # Hard cap: 2x(in) + 2x(out) pipeline buffers + slack must fit the VMEM budget.
    max_rows = (budget_bytes - _SLACK_BYTES) // (4 * row_bytes)
    # Perf target: multi-MiB blocks amortize the ~0.35us per-grid-step overhead.
    tgt_rows = max(1, target_bytes // row_bytes)
    tb = min(n, max_rows, tgt_rows)
    if tb <= 0:
        return 0                               # even one row blows VMEM -> two-pass
    if tb >= n:
        # Whole batch fits one block; still keep >=2 grid steps when the sublane
        # rule allows it so both v7x TensorCores draw HBM bandwidth.
        if n >= 2 * sublane:
            return ((n // 2) // sublane) * sublane
        return n
    tb = (tb // sublane) * sublane             # sublane-packed row count
    if tb == 0:
        # Target allows < sublane rows; take a sublane group if the budget covers
        # it, otherwise fall back to the two-pass kernel.
        tb = sublane if (max_rows >= sublane and n > sublane) else 0
    return tb


# ---------------------------------------------------------------------------
# Two-pass fallback for samples whose rows don't fit the VMEM budget.
# Pass 1: per-row running min/max over CHW chunks (VMEM accumulator).
# Pass 2: normalize each CHW chunk using the reduced per-row min/max.
# ---------------------------------------------------------------------------
def _row_minmax_kernel(x_ref, mm_ref, mn_sc, mx_sc, *, total_cols, needs_mask):
    c = pl.program_id(0)
    x = x_ref[...]
    if needs_mask:
        # Last chunk may extend past CHW; padded lanes must not pollute min/max.
        tc = x.shape[-1]
        col = lax.broadcasted_iota(jnp.int32, x.shape, dimension=x.ndim - 1)
        valid = (c * tc + col) < total_cols
        x_min_src = jnp.where(valid, x, jnp.asarray(jnp.inf, dtype=x.dtype))
        x_max_src = jnp.where(valid, x, jnp.asarray(-jnp.inf, dtype=x.dtype))
    else:
        x_min_src = x
        x_max_src = x
    pmin = jnp.min(x_min_src, axis=-1, keepdims=True).astype(jnp.float32)
    pmax = jnp.max(x_max_src, axis=-1, keepdims=True).astype(jnp.float32)

    @pl.when(c == 0)
    def _():
        mn_sc[...] = pmin
        mx_sc[...] = pmax

    @pl.when(c > 0)
    def _():
        mn_sc[...] = jnp.minimum(mn_sc[...], pmin)
        mx_sc[...] = jnp.maximum(mx_sc[...], pmax)

    @pl.when(c == pl.num_programs(0) - 1)
    def _():
        mm_ref[:, 0:1] = mn_sc[...]
        mm_ref[:, 1:2] = mx_sc[...]


def _apply_minmax_kernel(x_ref, mm_ref, o_ref):
    x = x_ref[...]
    mn = mm_ref[:, 0:1]                        # f32 (N, 1)
    mx = mm_ref[:, 1:2]
    inv = 1.0 / (mx - mn + jnp.float32(1e-6))  # exact f32 divide, N scalars
    o_ref[...] = ((x.astype(jnp.float32) - mn) * inv).astype(o_ref.dtype)


def _choose_chunk_cols(chw, n_rows, itemsize, target_bytes, budget_bytes):
    bytes_per_col = n_rows * itemsize
    max_cols = max(1, (budget_bytes - _SLACK_BYTES) // (4 * bytes_per_col))
    tgt_cols = max(1, target_bytes // bytes_per_col)
    tc = min(chw, max_cols, tgt_cols)
    if tc >= chw:
        return chw
    tc = (tc // 128) * 128                     # lane-aligned chunk
    if tc == 0:
        # TODO(synk): huge-batch x huge-image corner needs row+column tiling.
        tc = 128
    return tc


def _normalize_two_pass(x2, n, chw, itemsize, target_bytes, budget_bytes):
    tc = _choose_chunk_cols(chw, n, itemsize, target_bytes, budget_bytes)
    n_chunks = pl.cdiv(chw, tc)
    needs_mask = (chw % tc) != 0
    block_bytes = n * tc * itemsize

    minmax_kernel = functools.partial(
        _row_minmax_kernel, total_cols=chw, needs_mask=needs_mask)

    mm = pl.pallas_call(
        minmax_kernel,
        out_shape=jax.ShapeDtypeStruct((n, 2), jnp.float32),
        grid_spec=pltpu.PrefetchScalarGridSpec(
            num_scalar_prefetch=0,
            grid=(n_chunks,),
            in_specs=[pl.BlockSpec((n, tc), lambda c: (0, c))],
            out_specs=pl.BlockSpec((n, 2), lambda c: (0, 0)),
            scratch_shapes=[pltpu.VMEM((n, 1), jnp.float32),
                            pltpu.VMEM((n, 1), jnp.float32)],
        ),
        compiler_params=pltpu.CompilerParams(
            dimension_semantics=("arbitrary",),     # reduction over chunks
            vmem_limit_bytes=int(min(max(2 * block_bytes + 2 * _SLACK_BYTES,
                                         _MIN_VMEM_LIMIT), budget_bytes)),
        ),
    )(x2)

    out = pl.pallas_call(
        _apply_minmax_kernel,
        out_shape=jax.ShapeDtypeStruct((n, chw), x2.dtype),
        grid_spec=pltpu.PrefetchScalarGridSpec(
            num_scalar_prefetch=0,
            grid=(n_chunks,),
            in_specs=[pl.BlockSpec((n, tc), lambda c: (0, c)),
                      pl.BlockSpec((n, 2), lambda c: (0, 0))],
            out_specs=pl.BlockSpec((n, tc), lambda c: (0, c)),
        ),
        compiler_params=pltpu.CompilerParams(
            dimension_semantics=("parallel",),
            vmem_limit_bytes=int(min(max(4 * block_bytes + 2 * _SLACK_BYTES,
                                         _MIN_VMEM_LIMIT), budget_bytes)),
        ),
    )(x2, mm)
    return out


# ---------------------------------------------------------------------------
# Public wrapper: NormalizeLayer.forward for NCHW input.
# ---------------------------------------------------------------------------
def normalize_layer(x, *, donate_input=False, force_two_pass=False,
                    block_target_bytes=None, vmem_budget_bytes=None):
    N, C, H, W = x.shape
    CHW = C * H * W
    itemsize = jnp.dtype(x.dtype).itemsize
    sublane = max(8, 32 // itemsize)           # 8 f32 / 16 bf16 / 32 int8

    budget = vmem_budget_bytes if vmem_budget_bytes is not None else _vmem_budget_bytes()
    target = block_target_bytes if block_target_bytes is not None else max(budget // 8, 4 << 20)

    # Free reshape (NCHW is contiguous): each sample -> one lane-dense row.
    x2 = x.reshape(N, CHW)

    TB = 0 if force_two_pass else _choose_block_rows(
        N, CHW * itemsize, sublane, target, budget)

    if TB > 0:
        block_bytes = TB * CHW * itemsize
        vmem_limit = int(min(max(4 * block_bytes + _SLACK_BYTES, _MIN_VMEM_LIMIT),
                             budget))
        call_kwargs = {}
        if donate_input:
            # Reuse the input HBM buffer for the output (caller must not need x).
            call_kwargs["input_output_aliases"] = {0: 0}
        out = pl.pallas_call(
            _normalize_rows_kernel,
            out_shape=jax.ShapeDtypeStruct((N, CHW), x.dtype),
            grid_spec=pltpu.PrefetchScalarGridSpec(
                num_scalar_prefetch=0,
                grid=(pl.cdiv(N, TB),),
                in_specs=[pl.BlockSpec((TB, CHW), lambda b: (b, 0))],
                out_specs=pl.BlockSpec((TB, CHW), lambda b: (b, 0)),
            ),
            compiler_params=pltpu.CompilerParams(
                dimension_semantics=("parallel",),
                vmem_limit_bytes=vmem_limit,
            ),
            **call_kwargs,
        )(x2)
    else:
        out = _normalize_two_pass(x2, N, CHW, itemsize, target, budget)

    return out.reshape(N, C, H, W)


def _reference(x):
    min_val = jnp.min(x, axis=(1, 2, 3), keepdims=True)
    max_val = jnp.max(x, axis=(1, 2, 3), keepdims=True)
    return (x - min_val) / (max_val - min_val + 1e-6)


if __name__ == "__main__":
    key = jax.random.PRNGKey(0)
    x = jax.random.normal(key, (2, 4, 16, 16), dtype=jnp.float32)

    y_ref = _reference(x)

    # Primary single-pass path (lane-dense rows, multi-row blocks).
    y = jax.block_until_ready(normalize_layer(x))
    assert y.shape == x.shape
    assert y.dtype == x.dtype
    assert jnp.allclose(y, y_ref, atol=1e-6, rtol=1e-6), "single-pass mismatch"

    # Two-pass fallback (used when a single sample row would blow the VMEM
    # budget); forced here with a tiny chunk target so the path — including the
    # partial-chunk masking — is compiled and checked on a small shape.
    y2 = jax.block_until_ready(
        normalize_layer(x, force_two_pass=True, block_target_bytes=3072))
    assert y2.shape == x.shape
    assert y2.dtype == x.dtype
    assert jnp.allclose(y2, y_ref, atol=1e-6, rtol=1e-6), "two-pass mismatch"

    print("KERNEL_OK")
</pallas_src>

<mosaic_0001>
module attributes {stable_mosaic.version = 11 : i64} {
  func.func @_normalize_rows_kernel(%arg0: i32, %arg1: memref<2x1024xf32, #tpu.memory_space<vmem>>, %arg2: memref<2x1024xf32, #tpu.memory_space<vmem>>) attributes {dimension_semantics = [#tpu.dimension_semantics<parallel>], iteration_bounds = array<i64: 1>, scalar_prefetch = 0 : i64, scratch_operands = 0 : i64, tpu.core_type = #tpu.core_type<tc>, window_params = [{transform_indices = @transform_0, window_bounds = array<i64: 2, 1024>}, {transform_indices = @transform_1, window_bounds = array<i64: 2, 1024>}]} {
    %c0 = arith.constant 0 : index
    %c0_0 = arith.constant 0 : index
    %0 = vector.load %arg1[%c0, %c0_0] : memref<2x1024xf32, #tpu.memory_space<vmem>>, vector<2x1024xf32>
    %cst = arith.constant dense<0x7F800000> : vector<2xf32>
    %1 = vector.multi_reduction <minimumf>, %0, %cst [1] : vector<2x1024xf32> to vector<2xf32>
    %2 = vector.shape_cast %1 : vector<2xf32> to vector<2x1xf32>
    %cst_1 = arith.constant dense<0xFF800000> : vector<2xf32>
    %3 = vector.multi_reduction <maximumf>, %0, %cst_1 [1] : vector<2x1024xf32> to vector<2xf32>
    %4 = vector.shape_cast %3 : vector<2xf32> to vector<2x1xf32>
    %5 = arith.subf %4, %2 : vector<2x1xf32>
    %cst_2 = arith.constant 9.99999997E-7 : f32
    %6 = vector.broadcast %cst_2 : f32 to vector<2x1xf32>
    %7 = arith.addf %5, %6 : vector<2x1xf32>
    %cst_3 = arith.constant 1.000000e+00 : f32
    %8 = vector.broadcast %cst_3 : f32 to vector<2x1xf32>
    %9 = arith.divf %8, %7 : vector<2x1xf32>
    %10 = vector.broadcast %2 : vector<2x1xf32> to vector<2x1024xf32>
    %11 = arith.subf %0, %10 : vector<2x1024xf32>
    %12 = vector.broadcast %9 : vector<2x1xf32> to vector<2x1024xf32>
    %13 = arith.mulf %11, %12 : vector<2x1024xf32>
    %c0_4 = arith.constant 0 : index
    %c0_5 = arith.constant 0 : index
    %14 = vector.load %arg2[%c0_4, %c0_5] : memref<2x1024xf32, #tpu.memory_space<vmem>>, vector<2x1024xf32>
    tpu.vector_store %arg2[%c0_4, %c0_5], %13 {strides = array<i32>} : memref<2x1024xf32, #tpu.memory_space<vmem>>, vector<2x1024xf32>,
    return
  }
  func.func @transform_0(%arg0: i32) -> (i32, i32) {
    %c0_i32 = arith.constant 0 : i32
    %c0_i32_0 = arith.constant 0 : i32
    return %arg0, %c0_i32 : i32, i32
  }
  func.func @transform_1(%arg0: i32) -> (i32, i32) {
    %c0_i32 = arith.constant 0 : i32
    %c0_i32_0 = arith.constant 0 : i32
    return %arg0, %c0_i32 : i32, i32
  }
}

</mosaic_0001>

<bundles_post_ra>
// kernel: tpu_custom_call.1
= control target key start
LH: loop header
LB: loop body
LE: loop exit
PB: predicated region body
PF: predicated region fallthrough
CT: control target
= control target key end

     0   :  { %6 = vsyncpa [#allocation3], 0  ;;  %s255_s0 = inlined_call_operand.hbm [shape: f32[2,1024], index: 0, kind: input, shape index: {}]   ;;  %s256_s1 = inlined_call_operand.hbm [shape: f32[2,1024], index: 1, kind: output, shape index: {}]  }
   0x1   :  { %7 = vsyncpa [#allocation4], 0  ;;  %s201_s6 = smov [#allocation2]   ;;  %s153_s10 = scalar_lea.hbm %s255_s0, 256 }
   0x2   :  { %s14_s7 = sshll.u32 %s201_s6, 4  ;;  %p154_p0 = scmp.ne.s32.totalorder %s255_s0, %s153_s10  ;;  %s15_s7 = int_to_ptr.vmem [resolvable:$true] %s14_s7 }
   0x3   :  { %p157_p1 = scmp.lt.u32.totalorder %s153_s10, %s255_s0 }
   0x5   :  { %p159_p2 = pnand %p157_p1, %p154_p0 }
   0x7   :  { %162 = shalt.err (!%p159_p2)
}
   0x8   :  { %s163_s15 = scalar_lea.vmem %s15_s7, 256  ;;  %p168_p4 = scmp.lt.s32.totalorder %s15_s7, %s15_s7 }
   0x9   :  { %p164_p3 = scmp.ne.s32.totalorder %s15_s7, %s163_s15  ;;  %p169_p5 = scmp.lt.s32.totalorder %s163_s15, %s163_s15 }
   0xb   :  { %p170_p6 = por %p169_p5, %p168_p4 }
   0xd   :  { %p171_p7 = pnand %p170_p6, %p164_p3 }
   0xf   :  { %174 = shalt.err (!%p171_p7)
}
  0x10   :  { %17 = dma.hbm_to_vmem [thread:$0]  %s255_s0, 256, %s15_s7, [#allocation3]  }
  0x11   :  { %197 = dma.done.wait [#allocation3], 256  }
  0x12   :  { %198 = vsyncadd [#allocation3], 4294967040  ;;  %v29_v0 = vlaneseq  ;;  %v202_v1 = vmov 1983009808   ;;  %v21_v6 = vld [vmem:[#allocation2] sm:$0xff]  ;;  %v22_v7 = vld [vmem:[#allocation2 + $0x8] sm:$0xff] }
  0x13   :  { %v27_v2 = vunpack.c.l.s4 %v202_v1  ;;  %vm67_vm0 = vcmask 1041408   ;;  %v25_v8 = vcombine.high %v21_v6, %v21_v6  ;;  %v42_v10 = vcombine.high %v22_v7, %v22_v7  ;;  %s204_s0 = smov [#allocation5]  }
  0x14   :  { %v30_v3 = vshrl.u32 %v29_v0, 7  ;;  %v203_v49 = vmov 269488144   ;;  %s136_s18 = sshll.u32 %s204_s0, 4  ;;  %s137_s18 = int_to_ptr.vmem [resolvable:$true] %s136_s18 }
  0x15   :  { %v28_v4 = vunpack.c.0.s8 %v27_v2  ;;  %v108_v50 = vunpack.c.l.s4 %v203_v49  ;;  %s175_s19 = scalar_lea.vmem %s137_s18, 256  ;;  %p180_p9 = scmp.lt.s32.totalorder %s137_s18, %s137_s18 }
  0x16   :  { %p176_p8 = scmp.ne.s32.totalorder %s137_s18, %s175_s19  ;;  %p181_p10 = scmp.lt.s32.totalorder %s175_s19, %s175_s19 }
  0x17   :  { %v31_v5 = vsub.s32 %v28_v4, %v30_v3  ;;  %v109_v54 = vunpack.c.0.s8 %v108_v50 }
  0x18   :  { %p182_p11 = por %p181_p10, %p180_p9 }
  0x19   :  { %v32_v9 = vrot.slane %v21_v6, %v31_v5  ;;  %v49_v11 = vrot.slane %v22_v7, %v31_v5  ;;  %v39_v12 = vrot.slane %v25_v8, %v31_v5  ;;  %v56_v14 = vrot.slane %v42_v10, %v31_v5 }
  0x1a   :  { %v112_v55 = vsub.s32 %v109_v54, %v30_v3  ;;  %p183_p12 = pnand %p182_p11, %p176_p8 }
  0x1b   :  { %v40_v13 = vcombine.high %v32_v9, %v32_v9  ;;  %v57_v15 = vcombine.high %v49_v11, %v49_v11  ;;  %v68_v16 = vsel %vm67_vm0, %v32_v9, inf  ;;  %v72_v17 = vsel %vm67_vm0, %v49_v11, inf }
  0x1c   :  { %v85_v18 = vsel %vm67_vm0, %v32_v9, -inf  ;;  %v89_v19 = vsel %vm67_vm0, %v49_v11, -inf  ;;  %v41_v20 = vcombine.high %v39_v12, %v39_v12  ;;  %v58_v21 = vcombine.high %v56_v14, %v56_v14 }
  0x1d   :  { %v69_v22 = vsel %vm67_vm0, %v40_v13, inf  ;;  %v70_v23 = vsel %vm67_vm0, %v39_v12, inf  ;;  %v73_v24 = vmin.f32 %v68_v16, %v72_v17  ;;  %v74_v25 = vsel %vm67_vm0, %v57_v15, inf }
  0x1e   :  { %v76_v26 = vsel %vm67_vm0, %v56_v14, inf  ;;  %v86_v27 = vsel %vm67_vm0, %v40_v13, -inf  ;;  %v71_v28 = vsel %vm67_vm0, %v41_v20, inf  ;;  %v75_v29 = vmin.f32 %v69_v22, %v74_v25 }
  0x1f   :  { %v77_v30 = vmin.f32 %v70_v23, %v76_v26  ;;  %v78_v31 = vsel %vm67_vm0, %v58_v21, inf  ;;  %v87_v33 = vsel %vm67_vm0, %v39_v12, -inf  ;;  %v88_v34 = vsel %vm67_vm0, %v41_v20, -inf }
  0x20   :  { %v79_v32 = vmin.f32 %v71_v28, %v78_v31  ;;  %v90_v35 = vmax.f32 %v85_v18, %v89_v19  ;;  %v80_v36 = vmin.f32 %v73_v24, %v75_v29  ;;  %v91_v37 = vsel %vm67_vm0, %v57_v15, -inf }
  0x21   :  { %v93_v38 = vsel %vm67_vm0, %v56_v14, -inf  ;;  %v95_v39 = vsel %vm67_vm0, %v58_v21, -inf  ;;  %v92_v41 = vmax.f32 %v86_v27, %v91_v37 }
  0x22   :  { %v81_v40 = vmin.f32 %v77_v30, %v79_v32  ;;  %v94_v42 = vmax.f32 %v87_v33, %v93_v38  ;;  %v96_v43 = vmax.f32 %v88_v34, %v95_v39 }
  0x23   :  { %v97_v45 = vmax.f32 %v90_v35, %v92_v41 }
  0x24   :  { %v82_v44 = vmin.f32 %v80_v36, %v81_v40  ;;  %v98_v46 = vmax.f32 %v94_v42, %v96_v43 }
  0x26   :  { %83 = vmin.xlane.f32.xlu0 %v82_v44  ;;  %v99_v47 = vmax.f32 %v97_v45, %v98_v46 }
  0x2a   :  { %100 = vmax.xlane.f32.xlu0 %v99_v47 }
  0xb3   :  { %v84_v48 = vpop.xlane.xlu0 %83 }
  0xb4   :  { %v113_v56 = vrot.slane %v84_v48, %v112_v55 }
  0xb6   :  { %v115_v58 = vsub.f32 %v21_v6, %v113_v56  ;;  %v116_v59 = vsub.f32 %v22_v7, %v113_v56 }
  0xb7   :  { %v101_v51 = vpop.xlane.xlu0 %100 }
  0xb8   :  { %v102_v52 = vsub.f32 %v101_v51, %v84_v48 }
  0xba   :  { %v103_v53 = vadd.f32 1e-06, %v102_v52 }
  0xbc   :  { %151 = vrcp.f32 %v103_v53 }
  0xc6   :  { %v152_v57 = vpop.eup %151 }
  0xc7   :  { %v124_v60 = vrot.slane %v152_v57, %v112_v55 }
  0xc9   :  { %v126_v61 = vmul.f32 %v124_v60, %v115_v58  ;;  %v127_v62 = vmul.f32 %v124_v60, %v116_v59 }
  0xcb   :  { %128 = vst [vmem:[#allocation5] sm:$0xff] %v126_v61  ;;  %129 = vst [vmem:[#allocation5 + $0x8] sm:$0xff] %v127_v62 }
  0xcc   :  { %186 = shalt.err (!%p183_p12)
}
  0xcd   :  { %s187_s22 = scalar_lea.hbm %s256_s1, 256 }
  0xce   :  { %p188_p13 = scmp.ne.s32.totalorder %s256_s1, %s187_s22  ;;  %p191_p0 = scmp.lt.u32.totalorder %s187_s22, %s256_s1 }
  0xd0   :  { %p193_p1 = pnand %p191_p0, %p188_p13 }
  0xd2   :  { %196 = shalt.err (!%p193_p1)
}
  0xd3   :  { %139 = dma.vmem_to_hbm [thread:$0]  %s137_s18, 256, %s256_s1, [#allocation4]  }
  0xd4   :  { %199 = dma.done.wait [#allocation4], 256  }
  0xd5   :  { %200 = vsyncadd [#allocation4], 4294967040 }
  0xd6   :  { %143 = vsyncpa [#allocation3], 1 }
  0xd7   :  { %144 = vsyncpa [#allocation4], 1 }

</bundles_post_ra>
